<compile_context>
chip_gen: v7x
topology: tpu7x:2x2x1
jax: 0.10.0
libtpu: 0.0.40
codegen_flags: <defaults>
</compile_context>

<pallas_src>
import functools
import math

import jax
import jax.numpy as jnp
from jax import lax
from jax.experimental import pallas as pl
from jax.experimental.pallas import tpu as pltpu

LN_EPS = 1e-5


# ---------------------------------------------------------------------------
# Kernel 1: fused (multi-head attention + residual + LayerNorm)
#   computes  LN(residual + Wo(softmax(Wq(x_q) @ Wk(x_kv)^T * scale) @ Wv(x_kv)))
#   grid = (batch, q_tiles, heads); heads innermost, accumulated in VMEM scratch.
# ---------------------------------------------------------------------------
def _mha_ln_kernel(xq_ref, xkv_ref, res_ref, wq_ref, wk_ref, wv_ref, wo_ref,
                   gamma_ref, beta_ref, o_ref, acc_ref, *, scale, n_head):
    h = pl.program_id(2)

    @pl.when(h == 0)
    def _():
        acc_ref[...] = jnp.zeros_like(acc_ref)

    xq = xq_ref[0].astype(jnp.bfloat16)     # [tq, d_model]
    xkv = xkv_ref[0].astype(jnp.bfloat16)   # [S_kv, d_model]

    # Per-head projections; weights are already [d_model, d_head] (no .T).
    q = jnp.dot(xq, wq_ref[0], preferred_element_type=jnp.float32)    # [tq, dk]
    k = jnp.dot(xkv, wk_ref[0], preferred_element_type=jnp.float32)   # [S_kv, dk]
    v = jnp.dot(xkv, wv_ref[0], preferred_element_type=jnp.float32)   # [S_kv, dv]

    # scores = q @ k^T without materializing a transpose.
    scores = lax.dot_general(
        q.astype(jnp.bfloat16), k.astype(jnp.bfloat16),
        dimension_numbers=(((1,), (1,)), ((), ())),
        preferred_element_type=jnp.float32) * scale                   # [tq, S_kv]

    # Softmax in f32 (max-subtracted), EUP approx reciprocal for the denom.
    scores = scores - jnp.max(scores, axis=-1, keepdims=True)
    p = jnp.exp(scores)
    p = p * pl.reciprocal(jnp.sum(p, axis=-1, keepdims=True), approx=True)

    ctx = jnp.dot(p.astype(jnp.bfloat16), v.astype(jnp.bfloat16),
                  preferred_element_type=jnp.float32)                 # [tq, dv]

    # Fused per-head output projection, accumulated (replaces concatenate + Wo).
    acc_ref[...] += jnp.dot(ctx.astype(jnp.bfloat16), wo_ref[0],
                            preferred_element_type=jnp.float32)       # [tq, d_model]

    @pl.when(h == n_head - 1)
    def _():
        # Fused residual add + LayerNorm (all f32).
        y = acc_ref[...] + res_ref[0].astype(jnp.float32)
        mu = jnp.mean(y, axis=-1, keepdims=True)
        yc = y - mu
        var = jnp.mean(yc * yc, axis=-1, keepdims=True)
        inv = lax.rsqrt(var + LN_EPS)
        o_ref[0] = (yc * inv * gamma_ref[...] + beta_ref[...]).astype(o_ref.dtype)


def mha_ln_block(x_q, x_kv, residual, wq_h, wk_h, wv_h, wo_h, gamma, beta):
    """LN(residual + MHA(query_src=x_q, kv_src=x_kv))."""
    B, Sq, dm = x_q.shape
    Skv = x_kv.shape[1]
    H, _, dk = wq_h.shape
    dv = wv_h.shape[2]
    scale = 1.0 / math.sqrt(dk)

    tq = Sq if Sq <= 256 else 256          # query-tile axis
    assert Sq % tq == 0
    n_qt = Sq // tq

    kernel = functools.partial(_mha_ln_kernel, scale=scale, n_head=H)
    return pl.pallas_call(
        kernel,
        out_shape=jax.ShapeDtypeStruct((B, Sq, dm), x_q.dtype),
        grid=(B, n_qt, H),
        in_specs=[
            pl.BlockSpec((1, tq, dm), lambda b, qi, h: (b, qi, 0)),   # x_q tile
            pl.BlockSpec((1, Skv, dm), lambda b, qi, h: (b, 0, 0)),   # x_kv (full)
            pl.BlockSpec((1, tq, dm), lambda b, qi, h: (b, qi, 0)),   # residual
            pl.BlockSpec((1, dm, dk), lambda b, qi, h: (h, 0, 0)),    # Wq[h]
            pl.BlockSpec((1, dm, dk), lambda b, qi, h: (h, 0, 0)),    # Wk[h]
            pl.BlockSpec((1, dm, dv), lambda b, qi, h: (h, 0, 0)),    # Wv[h]
            pl.BlockSpec((1, dv, dm), lambda b, qi, h: (h, 0, 0)),    # Wo[h]
            pl.BlockSpec((1, dm), lambda b, qi, h: (0, 0)),           # LN gamma
            pl.BlockSpec((1, dm), lambda b, qi, h: (0, 0)),           # LN beta
        ],
        out_specs=pl.BlockSpec((1, tq, dm), lambda b, qi, h: (b, qi, 0)),
        scratch_shapes=[pltpu.VMEM((tq, dm), jnp.float32)],
        compiler_params=pltpu.CompilerParams(
            dimension_semantics=("parallel", "parallel", "arbitrary")),
    )(x_q, x_kv, residual, wq_h, wk_h, wv_h, wo_h, gamma, beta)


# ---------------------------------------------------------------------------
# Kernel 2: fused (FFN + residual + LayerNorm)
#   computes  LN(residual + W2 @ relu(W1 @ x + b1) + b2)
# ---------------------------------------------------------------------------
def _ffn_ln_kernel(x_ref, res_ref, w1_ref, b1_ref, w2_ref, b2_ref,
                   gamma_ref, beta_ref, o_ref):
    x = x_ref[0].astype(jnp.bfloat16)                                   # [tq, dm]
    h1 = jnp.dot(x, w1_ref[...], preferred_element_type=jnp.float32)    # [tq, dff]
    h1 = jnp.maximum(h1 + b1_ref[...], 0.0)
    h2 = jnp.dot(h1.astype(jnp.bfloat16), w2_ref[...],
                 preferred_element_type=jnp.float32) + b2_ref[...]      # [tq, dm]
    y = h2 + res_ref[0].astype(jnp.float32)
    mu = jnp.mean(y, axis=-1, keepdims=True)
    yc = y - mu
    var = jnp.mean(yc * yc, axis=-1, keepdims=True)
    inv = lax.rsqrt(var + LN_EPS)
    o_ref[0] = (yc * inv * gamma_ref[...] + beta_ref[...]).astype(o_ref.dtype)


def ffn_ln_block(x, residual, w1_t, b1, w2_t, b2, gamma, beta):
    B, S, dm = x.shape
    dff = w1_t.shape[1]

    tq = S if S <= 256 else 256
    assert S % tq == 0
    n_qt = S // tq

    return pl.pallas_call(
        _ffn_ln_kernel,
        out_shape=jax.ShapeDtypeStruct((B, S, dm), x.dtype),
        grid=(B, n_qt),
        in_specs=[
            pl.BlockSpec((1, tq, dm), lambda b, qi: (b, qi, 0)),   # x tile
            pl.BlockSpec((1, tq, dm), lambda b, qi: (b, qi, 0)),   # residual
            pl.BlockSpec((dm, dff), lambda b, qi: (0, 0)),         # W1 (pre-T)
            pl.BlockSpec((1, dff), lambda b, qi: (0, 0)),          # b1
            pl.BlockSpec((dff, dm), lambda b, qi: (0, 0)),         # W2 (pre-T)
            pl.BlockSpec((1, dm), lambda b, qi: (0, 0)),           # b2
            pl.BlockSpec((1, dm), lambda b, qi: (0, 0)),           # LN gamma
            pl.BlockSpec((1, dm), lambda b, qi: (0, 0)),           # LN beta
        ],
        out_specs=pl.BlockSpec((1, tq, dm), lambda b, qi: (b, qi, 0)),
        compiler_params=pltpu.CompilerParams(
            dimension_semantics=("parallel", "parallel")),
    )(x, residual, w1_t, b1, w2_t, b2, gamma, beta)


# ---------------------------------------------------------------------------
# Host-side parameter plumbing (PyTorch [out, in] weights -> kernel layouts).
# ---------------------------------------------------------------------------
def _split_in_proj(w, n_head, d_head, dtype):
    # torch [H*d_head, d_model] -> [H, d_model, d_head]
    dm = w.shape[1]
    return jnp.transpose(w.reshape(n_head, d_head, dm), (0, 2, 1)).astype(dtype)


def _split_out_proj(wo, n_head, d_values, dtype):
    # torch [d_model, H*d_values] -> [H, d_values, d_model]
    dm = wo.shape[0]
    return wo.T.reshape(n_head, d_values, dm).astype(dtype)


def transformer_decoder_cell(encoder_output_eng, input_bg, params, *,
                             n_head, d_keys, d_values,
                             compute_dtype=jnp.bfloat16):
    p = params
    row = lambda a: a.reshape(1, -1).astype(jnp.float32)

    # MHA1 (self-attention) weights.
    wq1 = _split_in_proj(p["mha1_wq"], n_head, d_keys, compute_dtype)
    wk1 = _split_in_proj(p["mha1_wk"], n_head, d_keys, compute_dtype)
    wv1 = _split_in_proj(p["mha1_wv"], n_head, d_values, compute_dtype)
    wo1 = _split_out_proj(p["mha1_wo"], n_head, d_values, compute_dtype)
    # MHA2 (cross-attention) weights.
    wq2 = _split_in_proj(p["mha2_wq"], n_head, d_keys, compute_dtype)
    wk2 = _split_in_proj(p["mha2_wk"], n_head, d_keys, compute_dtype)
    wv2 = _split_in_proj(p["mha2_wv"], n_head, d_values, compute_dtype)
    wo2 = _split_out_proj(p["mha2_wo"], n_head, d_values, compute_dtype)
    # FFN weights ([in, out] layout).
    w1_t = p["ffn_w1"].T.astype(compute_dtype)
    w2_t = p["ffn_w2"].T.astype(compute_dtype)

    # norm_first == False branch; dropout == identity (inference).
    z2 = mha_ln_block(input_bg, input_bg, input_bg,
                      wq1, wk1, wv1, wo1, row(p["ln1_g"]), row(p["ln1_b"]))
    z4 = mha_ln_block(z2, encoder_output_eng, z2,
                      wq2, wk2, wv2, wo2, row(p["ln2_g"]), row(p["ln2_b"]))
    y = ffn_ln_block(z4, z4, w1_t, row(p["ffn_b1"]), w2_t, row(p["ffn_b2"]),
                     row(p["ln3_g"]), row(p["ln3_b"]))
    return y


# ---------------------------------------------------------------------------
# Pure-JAX f32 reference (mirrors the PyTorch module exactly).
# ---------------------------------------------------------------------------
def _ref_mha(inp, out, wq, wk, wv, wo, n_head, dk, dv):
    if out is None:
        out = inp
    B, Si, _ = inp.shape
    So = out.shape[1]
    scale = 1.0 / math.sqrt(dk)
    q = (out @ wq.T).reshape(B, So, n_head, dk).transpose(0, 2, 1, 3)
    k = (inp @ wk.T).reshape(B, Si, n_head, dk).transpose(0, 2, 3, 1)
    v = (inp @ wv.T).reshape(B, Si, n_head, dv).transpose(0, 2, 1, 3)
    a = jax.nn.softmax(jnp.matmul(q, k) * scale, axis=-1)
    o = jnp.matmul(a, v).transpose(0, 2, 1, 3).reshape(B, So, n_head * dv)
    return o @ wo.T


def _ref_ln(x, g, b):
    mu = x.mean(-1, keepdims=True)
    var = ((x - mu) ** 2).mean(-1, keepdims=True)
    return (x - mu) / jnp.sqrt(var + LN_EPS) * g + b


def reference_decoder_cell(enc, x, p, *, n_head, d_keys, d_values):
    z1 = _ref_mha(x, None, p["mha1_wq"], p["mha1_wk"], p["mha1_wv"], p["mha1_wo"],
                  n_head, d_keys, d_values)
    z2 = _ref_ln(x + z1, p["ln1_g"], p["ln1_b"])
    z3 = _ref_mha(enc, z2, p["mha2_wq"], p["mha2_wk"], p["mha2_wv"], p["mha2_wo"],
                  n_head, d_keys, d_values)
    z4 = _ref_ln(z2 + z3, p["ln2_g"], p["ln2_b"])
    z5 = jnp.maximum(z4 @ p["ffn_w1"].T + p["ffn_b1"], 0.0) @ p["ffn_w2"].T + p["ffn_b2"]
    return _ref_ln(z4 + z5, p["ln3_g"], p["ln3_b"])


# ---------------------------------------------------------------------------
# Init helpers (match torch.nn defaults).
# ---------------------------------------------------------------------------
def xavier_uniform(key, out_features, in_features, dtype=jnp.float32):
    bound = math.sqrt(6.0 / (in_features + out_features))
    return jax.random.uniform(key, (out_features, in_features),
                              minval=-bound, maxval=bound, dtype=dtype)


def linear_bias(key, out_features, in_features, dtype=jnp.float32):
    bound = 1.0 / math.sqrt(in_features)
    return jax.random.uniform(key, (out_features,),
                              minval=-bound, maxval=bound, dtype=dtype)


if __name__ == "__main__":
    B, S_tgt, S_src = 2, 8, 16
    n_head, d_model, d_keys, d_values, d_ff = 4, 32, 8, 8, 64

    root = jax.random.PRNGKey(0)
    ks = jax.random.split(root, 16)

    input_bg = jax.random.normal(ks[0], (B, S_tgt, d_model), dtype=jnp.float32)
    encoder_output_eng = jax.random.normal(ks[1], (B, S_src, d_model), dtype=jnp.float32)

    ones = jnp.ones((d_model,), jnp.float32)
    zeros = jnp.zeros((d_model,), jnp.float32)
    params = dict(
        mha1_wq=xavier_uniform(ks[2], n_head * d_keys, d_model),
        mha1_wk=xavier_uniform(ks[3], n_head * d_keys, d_model),
        mha1_wv=xavier_uniform(ks[4], n_head * d_values, d_model),
        mha1_wo=xavier_uniform(ks[5], d_model, n_head * d_values),
        ln1_g=ones, ln1_b=zeros,
        mha2_wq=xavier_uniform(ks[6], n_head * d_keys, d_model),
        mha2_wk=xavier_uniform(ks[7], n_head * d_keys, d_model),
        mha2_wv=xavier_uniform(ks[8], n_head * d_values, d_model),
        mha2_wo=xavier_uniform(ks[9], d_model, n_head * d_values),
        ln2_g=ones, ln2_b=zeros,
        ffn_w1=xavier_uniform(ks[10], d_ff, d_model),
        ffn_b1=linear_bias(ks[11], d_ff, d_model),
        ffn_w2=xavier_uniform(ks[12], d_model, d_ff),
        ffn_b2=linear_bias(ks[13], d_model, d_ff),
        ln3_g=ones, ln3_b=zeros,
    )

    out = transformer_decoder_cell(encoder_output_eng, input_bg, params,
                                   n_head=n_head, d_keys=d_keys, d_values=d_values)
    out = jax.block_until_ready(out)

    ref = reference_decoder_cell(encoder_output_eng, input_bg, params,
                                 n_head=n_head, d_keys=d_keys, d_values=d_values)

    assert out.shape == (B, S_tgt, d_model)
    max_err = float(jnp.max(jnp.abs(out - ref)))
    # bf16 MXU operands with f32 accumulation -> small, expected deviation vs f32 ref.
    assert jnp.allclose(out, ref, atol=5e-2, rtol=5e-2), \
        f"mismatch vs JAX reference (max abs err {max_err})"

    print("KERNEL_OK")
</pallas_src>

<mosaic_0001>
module attributes {stable_mosaic.version = 11 : i64} {
  func.func @_mha_ln_kernel(%arg0: i32, %arg1: i32, %arg2: i32, %arg3: memref<1x8x32xf32, #tpu.memory_space<vmem>>, %arg4: memref<1x8x32xf32, #tpu.memory_space<vmem>>, %arg5: memref<1x8x32xf32, #tpu.memory_space<vmem>>, %arg6: memref<1x32x8xbf16, #tpu.memory_space<vmem>>, %arg7: memref<1x32x8xbf16, #tpu.memory_space<vmem>>, %arg8: memref<1x32x8xbf16, #tpu.memory_space<vmem>>, %arg9: memref<1x8x32xbf16, #tpu.memory_space<vmem>>, %arg10: memref<1x32xf32, #tpu.memory_space<vmem>>, %arg11: memref<1x32xf32, #tpu.memory_space<vmem>>, %arg12: memref<1x8x32xf32, #tpu.memory_space<vmem>>, %arg13: memref<8x32xf32, #tpu.memory_space<vmem>>) attributes {dimension_semantics = [#tpu.dimension_semantics<parallel>, #tpu.dimension_semantics<parallel>, #tpu.dimension_semantics<arbitrary>], iteration_bounds = array<i64: 2, 1, 4>, scalar_prefetch = 0 : i64, scratch_operands = 1 : i64, tpu.core_type = #tpu.core_type<tc>, window_params = [{transform_indices = @transform_0, window_bounds = array<i64: 1, 8, 32>}, {transform_indices = @transform_1, window_bounds = array<i64: 1, 8, 32>}, {transform_indices = @transform_2, window_bounds = array<i64: 1, 8, 32>}, {transform_indices = @transform_3, window_bounds = array<i64: 1, 32, 8>}, {transform_indices = @transform_4, window_bounds = array<i64: 1, 32, 8>}, {transform_indices = @transform_5, window_bounds = array<i64: 1, 32, 8>}, {transform_indices = @transform_6, window_bounds = array<i64: 1, 8, 32>}, {pipeline_mode = #tpu.pipeline_mode<synchronous>, transform_indices = @transform_7, window_bounds = array<i64: 1, 32>}, {pipeline_mode = #tpu.pipeline_mode<synchronous>, transform_indices = @transform_8, window_bounds = array<i64: 1, 32>}, {transform_indices = @transform_9, window_bounds = array<i64: 1, 8, 32>}]} {
    %c0_i32 = arith.constant 0 : i32
    %0 = arith.cmpi eq, %arg2, %c0_i32 : i32
    %1 = arith.extui %0 : i1 to i32
    %c0_i32_0 = arith.constant 0 : i32
    %2 = arith.cmpi ne, %1, %c0_i32_0 : i32
    scf.if %2 {
      %cst_31 = arith.constant 0.000000e+00 : f32
      %46 = vector.broadcast %cst_31 : f32 to vector<8x32xf32>
      %c0_32 = arith.constant 0 : index
      %c0_33 = arith.constant 0 : index
      %47 = vector.load %arg13[%c0_32, %c0_33] : memref<8x32xf32, #tpu.memory_space<vmem>>, vector<8x32xf32>
      tpu.vector_store %arg13[%c0_32, %c0_33], %46 {strides = array<i32>} : memref<8x32xf32, #tpu.memory_space<vmem>>, vector<8x32xf32>,
    } else {
    }
    %c0 = arith.constant 0 : index
    %c0_1 = arith.constant 0 : index
    %c0_2 = arith.constant 0 : index
    %3 = vector.load %arg3[%c0, %c0_1, %c0_2] : memref<1x8x32xf32, #tpu.memory_space<vmem>>, vector<1x8x32xf32>
    %4 = vector.shape_cast %3 : vector<1x8x32xf32> to vector<8x32xf32>
    %5 = arith.truncf %4 : vector<8x32xf32> to vector<8x32xbf16>
    %c0_3 = arith.constant 0 : index
    %c0_4 = arith.constant 0 : index
    %c0_5 = arith.constant 0 : index
    %6 = vector.load %arg4[%c0_3, %c0_4, %c0_5] : memref<1x8x32xf32, #tpu.memory_space<vmem>>, vector<1x8x32xf32>
    %7 = vector.shape_cast %6 : vector<1x8x32xf32> to vector<8x32xf32>
    %8 = arith.truncf %7 : vector<8x32xf32> to vector<8x32xbf16>
    %c0_6 = arith.constant 0 : index
    %c0_7 = arith.constant 0 : index
    %c0_8 = arith.constant 0 : index
    %9 = vector.load %arg6[%c0_6, %c0_7, %c0_8] : memref<1x32x8xbf16, #tpu.memory_space<vmem>>, vector<1x32x8xbf16>
    %10 = vector.shape_cast %9 : vector<1x32x8xbf16> to vector<32x8xbf16>
    %cst = arith.constant dense<0.000000e+00> : vector<8x8xf32>
    %11 = tpu.matmul %5, %10, %cst {dimension_numbers = #tpu.dot_dimension_numbers<[1], [0], [0], [1], [0, 0, 1, 1], [], []>} : vector<8x32xbf16>, vector<32x8xbf16>, vector<8x8xf32> -> vector<8x8xf32>
    %c0_9 = arith.constant 0 : index
    %c0_10 = arith.constant 0 : index
    %c0_11 = arith.constant 0 : index
    %12 = vector.load %arg7[%c0_9, %c0_10, %c0_11] : memref<1x32x8xbf16, #tpu.memory_space<vmem>>, vector<1x32x8xbf16>
    %13 = vector.shape_cast %12 : vector<1x32x8xbf16> to vector<32x8xbf16>
    %cst_12 = arith.constant dense<0.000000e+00> : vector<8x8xf32>
    %14 = tpu.matmul %8, %13, %cst_12 {dimension_numbers = #tpu.dot_dimension_numbers<[1], [0], [0], [1], [0, 0, 1, 1], [], []>} : vector<8x32xbf16>, vector<32x8xbf16>, vector<8x8xf32> -> vector<8x8xf32>
    %c0_13 = arith.constant 0 : index
    %c0_14 = arith.constant 0 : index
    %c0_15 = arith.constant 0 : index
    %15 = vector.load %arg8[%c0_13, %c0_14, %c0_15] : memref<1x32x8xbf16, #tpu.memory_space<vmem>>, vector<1x32x8xbf16>
    %16 = vector.shape_cast %15 : vector<1x32x8xbf16> to vector<32x8xbf16>
    %cst_16 = arith.constant dense<0.000000e+00> : vector<8x8xf32>
    %17 = tpu.matmul %8, %16, %cst_16 {dimension_numbers = #tpu.dot_dimension_numbers<[1], [0], [0], [1], [0, 0, 1, 1], [], []>} : vector<8x32xbf16>, vector<32x8xbf16>, vector<8x8xf32> -> vector<8x8xf32>
    %18 = arith.truncf %11 : vector<8x8xf32> to vector<8x8xbf16>
    %19 = arith.truncf %14 : vector<8x8xf32> to vector<8x8xbf16>
    %cst_17 = arith.constant dense<0.000000e+00> : vector<8x8xf32>
    %20 = tpu.matmul %18, %19, %cst_17 {dimension_numbers = #tpu.dot_dimension_numbers<[1], [1], [0], [0], [0, 0, 1, 0], [], []>} : vector<8x8xbf16>, vector<8x8xbf16>, vector<8x8xf32> -> vector<8x8xf32>
    %cst_18 = arith.constant 0.353553385 : f32
    %21 = vector.broadcast %cst_18 : f32 to vector<8x8xf32>
    %22 = arith.mulf %20, %21 : vector<8x8xf32>
    %cst_19 = arith.constant dense<0xFF800000> : vector<8xf32>
    %23 = vector.multi_reduction <maximumf>, %22, %cst_19 [1] : vector<8x8xf32> to vector<8xf32>
    %24 = vector.shape_cast %23 : vector<8xf32> to vector<8x1xf32>
    %25 = vector.broadcast %24 : vector<8x1xf32> to vector<8x8xf32>
    %26 = arith.subf %22, %25 : vector<8x8xf32>
    %27 = math.exp %26 : vector<8x8xf32>
    %cst_20 = arith.constant dense<0.000000e+00> : vector<8xf32>
    %28 = vector.multi_reduction <add>, %27, %cst_20 [1] : vector<8x8xf32> to vector<8xf32>
    %29 = vector.shape_cast %28 : vector<8xf32> to vector<8x1xf32>
    %30 = tpu.reciprocal %29 {approx = true} : vector<8x1xf32> -> vector<8x1xf32>
    %31 = vector.broadcast %30 : vector<8x1xf32> to vector<8x8xf32>
    %32 = arith.mulf %27, %31 : vector<8x8xf32>
    %33 = arith.truncf %32 : vector<8x8xf32> to vector<8x8xbf16>
    %34 = arith.truncf %17 : vector<8x8xf32> to vector<8x8xbf16>
    %cst_21 = arith.constant dense<0.000000e+00> : vector<8x8xf32>
    %35 = tpu.matmul %33, %34, %cst_21 {dimension_numbers = #tpu.dot_dimension_numbers<[1], [0], [0], [1], [0, 0, 1, 1], [], []>} : vector<8x8xbf16>, vector<8x8xbf16>, vector<8x8xf32> -> vector<8x8xf32>
    %c0_22 = arith.constant 0 : index
    %c0_23 = arith.constant 0 : index
    %36 = vector.load %arg13[%c0_22, %c0_23] : memref<8x32xf32, #tpu.memory_space<vmem>>, vector<8x32xf32>
    %37 = arith.truncf %35 : vector<8x8xf32> to vector<8x8xbf16>
    %c0_24 = arith.constant 0 : index
    %c0_25 = arith.constant 0 : index
    %c0_26 = arith.constant 0 : index
    %38 = vector.load %arg9[%c0_24, %c0_25, %c0_26] : memref<1x8x32xbf16, #tpu.memory_space<vmem>>, vector<1x8x32xbf16>
    %39 = vector.shape_cast %38 : vector<1x8x32xbf16> to vector<8x32xbf16>
    %cst_27 = arith.constant dense<0.000000e+00> : vector<8x32xf32>
    %40 = tpu.matmul %37, %39, %cst_27 {dimension_numbers = #tpu.dot_dimension_numbers<[1], [0], [0], [1], [0, 0, 1, 1], [], []>} : vector<8x8xbf16>, vector<8x32xbf16>, vector<8x32xf32> -> vector<8x32xf32>
    %41 = arith.addf %36, %40 : vector<8x32xf32>
    %c0_28 = arith.constant 0 : index
    %c0_29 = arith.constant 0 : index
    %42 = vector.load %arg13[%c0_28, %c0_29] : memref<8x32xf32, #tpu.memory_space<vmem>>, vector<8x32xf32>
    tpu.vector_store %arg13[%c0_28, %c0_29], %41 {strides = array<i32>} : memref<8x32xf32, #tpu.memory_space<vmem>>, vector<8x32xf32>,
    %c3_i32 = arith.constant 3 : i32
    %43 = arith.cmpi eq, %arg2, %c3_i32 : i32
    %44 = arith.extui %43 : i1 to i32
    %c0_i32_30 = arith.constant 0 : i32
    %45 = arith.cmpi ne, %44, %c0_i32_30 : i32
    scf.if %45 {
      %c0_31 = arith.constant 0 : index
      %c0_32 = arith.constant 0 : index
      %46 = vector.load %arg13[%c0_31, %c0_32] : memref<8x32xf32, #tpu.memory_space<vmem>>, vector<8x32xf32>
      %c0_33 = arith.constant 0 : index
      %c0_34 = arith.constant 0 : index
      %c0_35 = arith.constant 0 : index
      %47 = vector.load %arg5[%c0_33, %c0_34, %c0_35] : memref<1x8x32xf32, #tpu.memory_space<vmem>>, vector<1x8x32xf32>
      %48 = vector.shape_cast %47 : vector<1x8x32xf32> to vector<8x32xf32>
      %49 = arith.addf %46, %48 : vector<8x32xf32>
      %cst_36 = arith.constant dense<0.000000e+00> : vector<8xf32>
      %50 = vector.multi_reduction <add>, %49, %cst_36 [1] : vector<8x32xf32> to vector<8xf32>
      %51 = vector.shape_cast %50 : vector<8xf32> to vector<8x1xf32>
      %cst_37 = arith.constant 3.200000e+01 : f32
      %52 = vector.broadcast %cst_37 : f32 to vector<8x1xf32>
      %53 = arith.divf %51, %52 : vector<8x1xf32>
      %54 = vector.broadcast %53 : vector<8x1xf32> to vector<8x32xf32>
      %55 = arith.subf %49, %54 : vector<8x32xf32>
      %56 = arith.mulf %55, %55 : vector<8x32xf32>
      %cst_38 = arith.constant dense<0.000000e+00> : vector<8xf32>
      %57 = vector.multi_reduction <add>, %56, %cst_38 [1] : vector<8x32xf32> to vector<8xf32>
      %58 = vector.shape_cast %57 : vector<8xf32> to vector<8x1xf32>
      %cst_39 = arith.constant 3.200000e+01 : f32
      %59 = vector.broadcast %cst_39 : f32 to vector<8x1xf32>
      %60 = arith.divf %58, %59 : vector<8x1xf32>
      %cst_40 = arith.constant 9.99999974E-6 : f32
      %61 = vector.broadcast %cst_40 : f32 to vector<8x1xf32>
      %62 = arith.addf %60, %61 : vector<8x1xf32>
      %63 = math.rsqrt %62 : vector<8x1xf32>
      %64 = vector.broadcast %63 : vector<8x1xf32> to vector<8x32xf32>
      %65 = arith.mulf %55, %64 : vector<8x32xf32>
      %c0_41 = arith.constant 0 : index
      %c0_42 = arith.constant 0 : index
      %66 = vector.load %arg10[%c0_41, %c0_42] : memref<1x32xf32, #tpu.memory_space<vmem>>, vector<1x32xf32>
      %67 = vector.broadcast %66 : vector<1x32xf32> to vector<8x32xf32>
      %68 = arith.mulf %65, %67 : vector<8x32xf32>
      %c0_43 = arith.constant 0 : index
      %c0_44 = arith.constant 0 : index
      %69 = vector.load %arg11[%c0_43, %c0_44] : memref<1x32xf32, #tpu.memory_space<vmem>>, vector<1x32xf32>
      %70 = vector.broadcast %69 : vector<1x32xf32> to vector<8x32xf32>
      %71 = arith.addf %68, %70 : vector<8x32xf32>
      %c0_45 = arith.constant 0 : index
      %c0_46 = arith.constant 0 : index
      %c0_47 = arith.constant 0 : index
      %72 = vector.load %arg12[%c0_45, %c0_46, %c0_47] : memref<1x8x32xf32, #tpu.memory_space<vmem>>, vector<1x8x32xf32>
      %73 = vector.shape_cast %72 : vector<1x8x32xf32> to vector<8x32xf32>
      %74 = vector.shape_cast %71 : vector<8x32xf32> to vector<1x8x32xf32>
      tpu.vector_store %arg12[%c0_45, %c0_46, %c0_47], %74 {strides = array<i32>} : memref<1x8x32xf32, #tpu.memory_space<vmem>>, vector<1x8x32xf32>,
    } else {
    }
    return
  }
  func.func @transform_0(%arg0: i32, %arg1: i32, %arg2: i32) -> (i32, i32, i32) {
    %c0_i32 = arith.constant 0 : i32
    %c0_i32_0 = arith.constant 0 : i32
    return %arg0, %arg1, %c0_i32 : i32, i32, i32
  }
  func.func @transform_1(%arg0: i32, %arg1: i32, %arg2: i32) -> (i32, i32, i32) {
    %c0_i32 = arith.constant 0 : i32
    %c0_i32_0 = arith.constant 0 : i32
    %c0_i32_1 = arith.constant 0 : i32
    return %arg0, %c0_i32, %c0_i32_0 : i32, i32, i32
  }
  func.func @transform_2(%arg0: i32, %arg1: i32, %arg2: i32) -> (i32, i32, i32) {
    %c0_i32 = arith.constant 0 : i32
    %c0_i32_0 = arith.constant 0 : i32
    return %arg0, %arg1, %c0_i32 : i32, i32, i32
  }
  func.func @transform_3(%arg0: i32, %arg1: i32, %arg2: i32) -> (i32, i32, i32) {
    %c0_i32 = arith.constant 0 : i32
    %c0_i32_0 = arith.constant 0 : i32
    %c0_i32_1 = arith.constant 0 : i32
    return %arg2, %c0_i32, %c0_i32_0 : i32, i32, i32
  }
  func.func @transform_4(%arg0: i32, %arg1: i32, %arg2: i32) -> (i32, i32, i32) {
    %c0_i32 = arith.constant 0 : i32
    %c0_i32_0 = arith.constant 0 : i32
    %c0_i32_1 = arith.constant 0 : i32
    return %arg2, %c0_i32, %c0_i32_0 : i32, i32, i32
  }
  func.func @transform_5(%arg0: i32, %arg1: i32, %arg2: i32) -> (i32, i32, i32) {
    %c0_i32 = arith.constant 0 : i32
    %c0_i32_0 = arith.constant 0 : i32
    %c0_i32_1 = arith.constant 0 : i32
    return %arg2, %c0_i32, %c0_i32_0 : i32, i32, i32
  }
  func.func @transform_6(%arg0: i32, %arg1: i32, %arg2: i32) -> (i32, i32, i32) {
    %c0_i32 = arith.constant 0 : i32
    %c0_i32_0 = arith.constant 0 : i32
    %c0_i32_1 = arith.constant 0 : i32
    return %arg2, %c0_i32, %c0_i32_0 : i32, i32, i32
  }
  func.func @transform_7(%arg0: i32, %arg1: i32, %arg2: i32) -> (i32, i32) {
    %c0_i32 = arith.constant 0 : i32
    %c0_i32_0 = arith.constant 0 : i32
    %c0_i32_1 = arith.constant 0 : i32
    return %c0_i32, %c0_i32_0 : i32, i32
  }
  func.func @transform_8(%arg0: i32, %arg1: i32, %arg2: i32) -> (i32, i32) {
    %c0_i32 = arith.constant 0 : i32
    %c0_i32_0 = arith.constant 0 : i32
    %c0_i32_1 = arith.constant 0 : i32
    return %c0_i32, %c0_i32_0 : i32, i32
  }
  func.func @transform_9(%arg0: i32, %arg1: i32, %arg2: i32) -> (i32, i32, i32) {
    %c0_i32 = arith.constant 0 : i32
    %c0_i32_0 = arith.constant 0 : i32
    return %arg0, %arg1, %c0_i32 : i32, i32, i32
  }
}

</mosaic_0001>

<bundles_post_ra>
// kernel: tpu_custom_call.1
= control target key start
LH: loop header
LB: loop body
LE: loop exit
PB: predicated region body
PF: predicated region fallthrough
CT: control target
= control target key end

     0   :  { %s1572_s0 = inlined_call_operand.vmem [shape: f32[2,8,32], index: 0, kind: input, shape index: {}]   ;;  %s1573_s1 = inlined_call_operand.vmem [shape: f32[2,8,32], index: 1, kind: input, shape index: {}]   ;;  %s1574_s2 = inlined_call_operand.vmem [shape: f32[2,8,32], index: 2, kind: input, shape index: {}]   ;;  %s1575_s3 = inlined_call_operand.vmem [shape: bf16[4,32,8], index: 3, kind: input, shape index: {}]   ;;  %s1576_s4 = inlined_call_operand.vmem [shape: bf16[4,32,8], index: 4, kind: input, shape index: {}]   ;;  %s1577_s5 = inlined_call_operand.vmem [shape: bf16[4,32,8], index: 5, kind: input, shape index: {}]   ;;  %s1578_s6 = inlined_call_operand.vmem [shape: bf16[4,8,32], index: 6, kind: input, shape index: {}]   ;;  %s1579_s7 = inlined_call_operand.vmem [shape: f32[1,32], index: 7, kind: input, shape index: {}]   ;;  %s1580_s8 = inlined_call_operand.vmem [shape: f32[1,32], index: 8, kind: input, shape index: {}]   ;;  %s1581_s9 = inlined_call_operand.hbm [shape: f32[2,8,32], index: 9, kind: output, shape index: {}]  }
   0x1   :  { %1594 = sst [smem:[#allocation16_spill]] %s1573_s1 }
   0x2   :  { %1595 = sst [smem:[#allocation17_spill]] %s1581_s9 }
   0x3   :  { %14 = vsyncpa [#allocation4], 0 }
   0x4   :  { %16 = vsyncpa [#allocation4 + $0x1], 0  ;;  %s1366_s30 = smov 0   ;;  %s1368_s10 = smov 0  }
   0x5   :  { %s1370_s11 = smov 0   ;;  %s1372_s12 = smov 0  }
   0x6   :  { %s1374_s13 = smov 0   ;;  %s1376_s14 = smov 0  }
   0x7   :  { %s1378_s15 = smov 0   ;;  %s1380_s16 = smov 0  }
   0x8 LB: > { %1596 = sst [smem:[#allocation6_spill]] %s1282_s30  ;;  %s1034_s17 = sadd.s32 4294967295, %s1310_s16   ;;  %s1310_s16 = sphi %s1380_s16, %s22_s16   ;;  %s1306_s15 = sphi %s1378_s15, %s1621_s15   ;;  %s1302_s14 = sphi %s1376_s14, %s1620_s14   ;;  %s1298_s13 = sphi %s1374_s13, %s1619_s13   ;;  %s1294_s12 = sphi %s1372_s12, %s1618_s12   ;;  %s1290_s11 = sphi %s1370_s11, %s1617_s11   ;;  %s1286_s10 = sphi %s1368_s10, %s1623_s10   ;;  %s1282_s30 = sphi %s1366_s30, %s1622_s30  }
   0x9   : > { %1597 = sst [smem:[#allocation7_spill]] %s1290_s11  ;;  %s1035_s18 = sadd.s32 4294967294, %s1310_s16  }
   0xa   : > { %1598 = sst [smem:[#allocation8_spill]] %s1302_s14  ;;  %s34_s19 = sadd.s32 1, %s1302_s14 }
   0xb   : > { %1599 = sst [smem:[#allocation9_spill]] %s1306_s15  ;;  %p35_p0 = scmp.ge.s32.totalorder %s34_s19, 4 }
   0xc   : > { %1600 = sst [smem:[#allocation10_spill]] %s1310_s16  ;;  %s41_s20 = sadd.s32 1, %s1306_s15 }
   0xd   : > { %p288_p1 = scmp.ne.s32.totalorder %s1290_s11, %s1286_s10  ;;  %p289_p2 = scmp.eq.s32.totalorder %s1034_s17, 7 }
   0xe   : > { %s1625_s19 = smov (%p35_p0, %s34_s19), 0  ;;  %s1627_s20 = smov (!%p35_p0, %s41_s20), %s1306_s15 }
   0xf   : > { %1601 = sst [smem:[#allocation11_spill]] %s1625_s19  ;;  %p1415_p3 = por %p289_p2, %p288_p1 }
  0x10   : > { %p294_p4 = scmp.ne.s32.totalorder %s1286_s10, %s1282_s30  ;;  %p43_p5 = scmp.ge.s32.totalorder %s1627_s20, 2 }
  0x11   : > { %s1602_s21 = scalar_select %p1415_p3, 1, 0 }
  0x12   : > { %p295_p6 = scmp.eq.s32.totalorder %s1035_s18, 7  ;;  %p1038_p7 = scmp.ge.s32.totalorder %s1310_s16, 1 }
  0x13   : > { %1603 = sst [smem:[#allocation12_spill]] %s1602_s21  ;;  %p377_p8 = scmp.lt.s32.totalorder %s1310_s16, 9 }
  0x14   : > { %s1629_s20 = smov (%p43_p5, %s1627_s20), 0  ;;  %p1425_p9 = por %p295_p6, %p294_p4 }
  0x15   : > { %1604 = sst [smem:[#allocation13_spill]] %s1629_s20  ;;  %p378_p10 = pnand %p1038_p7, %p377_p8 }
  0x16   : > { %s1605_s22 = scalar_select %p1425_p9, 1, 0 }
  0x17   : > { %s273_s23 = ssub.s32 %s1306_s15, %s1629_s20  ;;  %s278_s24 = sadd.s32 1, %s1290_s11 }
  0x18   : > { %1606 = sst [smem:[#allocation14_spill]] %s1605_s22  ;;  %p276_p11 = scmp.eq.s32.totalorder %s273_s23, 0 }
  0x19   : > { %381 = sbr.rel (%p378_p10) target bundleno = 1580 (0x62c), region = 56  ;;  %s1585_s26 = sand.u32 (!%p378_p10), 1, %s1286_s10  }
  0x1a   : > { %s1433_s25 = scalar_select %p276_p11, %s1290_s11, %s278_s24  }
  0x1b   : > { %p445_p12 = scmp.lt.s32.totalorder (!%p378_p10), %s1298_s13, 1  ;;  %s1439_s27 = sshll.u32 (!%p378_p10), %s1585_s26, 3 }
  0x1c   : > { %1607 = sst [smem:[#allocation15_spill]] %s1433_s25  ;;  %p463_p13 = scmp.lt.s32.totalorder (!%p378_p10), %s1294_s12, 3 }
  0x1d   : > { %s1608_s1 = sld [smem:[#allocation16_spill]] (!%p378_p10)  ;;  %s444_s26 = scalar_lea.vmem (!%p378_p10), [#allocation3], %s1439_s27 }
  0x1e   : > { %p1050_p0 = scmp.ne.s32.totalorder (!%p378_p10), %s1294_s12, 0 }
  0x20   : > { %s446_s28 = scalar_select %p445_p12, %s1298_s13, 1 }
  0x21   : > { %s464_s29 = scalar_select %p463_p13, %s1294_s12, 3 }
  0x22   : > { %s1444_s17 = sshll.u32 %s446_s28, 3  ;;  %486 = sbr.rel (%p1050_p0) target bundleno = 41 (0x29), region = 60  ;;  %vm487_vm0 = vcmask (!%p1050_p0), 261120   ;;  %v1312_v0 = vmov (!%p1050_p0), 0.0  }
  0x23   : > { %s455_s15 = scalar_lea.vmem %s1608_s1, %s1444_s17  ;;  %s462_s25 = scalar_lea.vmem %s1574_s2, %s1444_s17  ;;  %488 = vst.msk [vmem:[#allocation2] sm:$0xff] (!%p1050_p0), %vm487_vm0, %v1312_v0 }
  0x24   : > { %s1070_s11 = sshll.u32 %s464_s29, 4  ;;  %s1049_s19 = sshll.u32 %s464_s29, 2 }
  0x25   : > { %s467_s28 = scalar_lea.vmem %s1575_s3, %s1070_s11  ;;  %s472_s18 = scalar_lea.vmem %s1576_s4, %s1070_s11 }
  0x26   : > { %s1467_s24 = scalar_lea.vmem %s1577_s5, %s1070_s11  ;;  %s1472_s14 = scalar_lea.vmem %s1578_s6, %s1049_s19 }
  0x29 PF: > { %v1204_v1 = vld [vmem:[%s472_s18] sm:$0xff]   ;;  %v1313_v2 = vmov 0.0   ;;  %v1205_v3 = vld [vmem:[%s472_s18 + $0x8] sm:$0xff]   ;;  %vm1314_vm1 = vmmov 0   ;;  %s1609_s30 = scalar_lea.vmem %s1572_s0, %s1444_s17  ;;  %vm509_vm2 = vcmask 261120   ;;  %vm670_vm3 = vcmask 64512  }
  0x2a   : > { %1096 = vmatprep.subr.bf16.mxu1 %v1313_v2  ;;  %1088 = vmatprep.subr.bf16.mxu0 %v1313_v2  ;;  %v1206_v4 = vld [vmem:[%s467_s28] sm:$0xff]   ;;  %v1207_v6 = vld [vmem:[%s467_s28 + $0x8] sm:$0xff]   ;;  %vm734_vm4 = vcmask 1043456   ;;  %p1063_p1 = scmp.ne.s32.totalorder %s1294_s12, 3 }
  0x2b   : > { %1097 = vmatpush3.bf16.msra.mxu1 %v1204_v1  ;;  %1100 = vmatprep.mubr.msk.bf16.mxu1 %vm1314_vm1, %v1313_v2  ;;  %v491_v5 = vld [vmem:[%s455_s15] sm:$0xff]  ;;  %v1209_v22 = vld [vmem:[%s1467_s24 + $0x8] sm:$0xff]  }
  0x2c   : > { %1098 = vmatprep.subr.bf16.mxu1 %v1313_v2  ;;  %1092 = vmatprep.mubr.msk.bf16.mxu0 %vm1314_vm1, %v1313_v2  ;;  %v489_v7 = vld [vmem:[%s1609_s30] sm:$0xff]  ;;  %v492_v8 = vpack.c.bf16 %v491_v5, %v491_v5 }
  0x2d   : > { %1089 = vmatpush3.bf16.msra.mxu0 %v1206_v4  ;;  %v490_v9 = vpack.c.bf16 %v489_v7, %v489_v7  ;;  %v1208_v21 = vld [vmem:[%s1467_s24] sm:$0xff]  }
  0x2e   : > { %1090 = vmatprep.subr.bf16.mxu0 %v1313_v2  ;;  %v780_v40 = vld [vmem:[%s1472_s14] sm:$0xf] }
  0x2f   : > { %1099 = vmatpush3.bf16.msra.mxu1 %v1205_v3  ;;  %v785_v41 = vsel %vm734_vm4, %v780_v40, 0  ;;  %v778_v51 = vld [vmem:[#allocation2] sm:$0xff] }
  0x30   : > { %1112 = vmatprep.subr.bf16.mxu1 %v1313_v2  ;;  %v834_v58 = vld [vmem:[%s462_s25] sm:$0xff] (!%p1063_p1) }
  0x31   : > { %1091 = vmatpush3.bf16.msra.mxu0 %v1207_v6  ;;  %v1064_v6 = vld [vmem:[%s1579_s7] ss:$0 sm:$0xff] (!%p1063_p1) }
  0x32   : > { %1101 = vmatmul.mubr.msk.bf16.vlgmr.msra.gmra.mrb[0].mxu1 %vm509_vm2, %v492_v8  ;;  %1104 = vmatprep.subr.bf16.mxu0 %v1313_v2 }
  0x33   : > { %1114 = vmatprep.mubr.msk.bf16.mxu1 %vm1314_vm1, %v1313_v2 }
  0x34   : > { %1093 = vmatmul.mubr.msk.bf16.vlgmr.msra.gmra.mrb[0].mxu0 %vm509_vm2, %v490_v9 }
  0x35   : > { %1108 = vmatprep.mubr.msk.bf16.mxu0 %vm1314_vm1, %v1313_v2  ;;  %1105 = vmatpush3.bf16.msra.mxu0 %v1208_v21 }
  0x36   : > { %1106 = vmatprep.subr.bf16.mxu0 %v1313_v2 }
  0x39   : > { %1107 = vmatpush3.bf16.msra.mxu0 %v1209_v22 }
  0x3a   : > { %1118 = vmatprep.subr.bf16.mxu0 %v1313_v2 }
  0x3c   : > { %1109 = vmatmul.mubr.msk.bf16.vlgmr.msra.gmra.mrb[4].mxu0 %vm509_vm2, %v492_v8  ;;  %v1065_v8 = vld [vmem:[%s1580_s8] ss:$0 sm:$0xff] (!%p1063_p1) }
  0x3d   : > { %1120 = vmatprep.mubr.msk.bf16.mxu0 %vm1314_vm1, %v1313_v2 }
 0x105   : > { %v606_v10 = vpop.f32.mrb[0].mxu1 }
 0x106   : > { %v669_v11 = vpack.c.bf16 %v606_v10, %v606_v10  ;;  %v1102_v12 = vpop.f32.mrb[1].mxu1 }
 0x107   : > { %v609_v13 = vpop.f32.mrb[2].mxu1  ;;  %v547_v14 = vpop.f32.mrb[0].mxu0 }
 0x108   : > { %v675_v15 = vsel %vm670_vm3, %v669_v11, 0  ;;  %v1103_v16 = vpop.f32.mrb[3].mxu1  ;;  %v1094_v17 = vpop.f32.mrb[1].mxu0  ;;  %v668_v20 = vpack.c.bf16 %v547_v14, %v547_v14 }
 0x109   : > { %1113 = vmatpush3.bf16.xpose.msra.mxu1 %v675_v15  ;;  %v550_v18 = vpop.f32.mrb[2].mxu0 }
 0x10a   : > { %v1095_v19 = vpop.f32.mrb[3].mxu0  ;;  %1124 = vmatprep.subr.bf16.mxu1 %v1313_v2 }
 0x10f   : > { %v662_v34 = vpop.f32.mrb[4].mxu0 }
 0x110   : > { %1115 = vmatmul.mubr.msk.bf16.vlgmr.msra.gmra.mrb[4].mxu1 %vm670_vm3, %v668_v20  ;;  %v1110_v35 = vpop.f32.mrb[5].mxu0  ;;  %v730_v38 = vpack.c.bf16 %v662_v34, %v662_v34 }
 0x111   : > { %1126 = vmatprep.mubr.msk.bf16.mxu1 %vm1314_vm1, %v1313_v2  ;;  %v665_v36 = vpop.f32.mrb[6].mxu0  ;;  %1125 = vmatpush3.bf16.msra.mxu1 %v785_v41 }
 0x112   : > { %v1111_v37 = vpop.f32.mrb[7].mxu0  ;;  %v736_v39 = vsel %vm734_vm4, %v730_v38, 0 }
 0x113   : > { %1119 = vmatpush3.bf16.msra.mxu0 %v736_v39 }
 0x1e3   : > { %v711_v23 = vpop.f32.mrb[4].mxu1 }
 0x1e4   : > { %v717_v24 = vmul.f32 0.35355338, %v711_v23  ;;  %v1116_v25 = vpop.f32.mrb[5].mxu1 }
 0x1e5   : > { %v714_v26 = vpop.f32.mrb[6].mxu1 }
 0x1e6   : > { %v1117_v27 = vpop.f32.mrb[7].mxu1  ;;  %v718_v28 = vsel %vm670_vm3, %v717_v24, -inf }
 0x1e7   : > { %719 = vmax.xlane.f32.xlu0 %v718_v28 }
 0x274   : > { %v720_v29 = vpop.xlane.xlu0 %719 }
 0x275   : > { %v721_v30 = vsub.f32 %v717_v24, %v720_v29 }
 0x277   : > { %v722_v31 = vmul.f32 1.442695, %v721_v30 }
 0x279   : > { %1210 = vpow2.f32 %v722_v31 }
 0x283   : > { %v1211_v32 = vpop.eup %1210 }
 0x284   : > { %v724_v33 = vsel %vm670_vm3, %v1211_v32, 0.0 }
 0x285   : > { %725 = vadd.xlane.f32.xlu0 %v724_v33 }
 0x312   : > { %v726_v42 = vpop.xlane.xlu0 %725 }
 0x313   : > { %1212 = vrcp.f32 %v726_v42 }
 0x31d   : > { %v1213_v43 = vpop.eup %1212 }
 0x31e   : > { %v728_v44 = vmul.f32 %v1213_v43, %v1211_v32 }
 0x320   : > { %v729_v45 = vpack.c.bf16 %v728_v44, %v728_v44 }
 0x322   : > { %1121 = vmatmul.mubr.msk.bf16.vlgmr.msra.gmra.mrb[8].mxu0 %vm670_vm3, %v729_v45 }
 0x3f5   : > { %v772_v46 = vpop.f32.mrb[8].mxu0 }
 0x3f6   : > { %v779_v47 = vpack.c.bf16 %v772_v46, %v772_v46  ;;  %v1122_v48 = vpop.f32.mrb[9].mxu0 }
 0x3f7   : > { %v775_v49 = vpop.f32.mrb[10].mxu0 }
 0x3f8   : > { %v1123_v50 = vpop.f32.mrb[11].mxu0  ;;  %1127 = vmatmul.mubr.msk.bf16.vlgmr.msra.gmra.mrb[8].mxu1 %vm670_vm3, %v779_v47 }
 0x4c8   : > { %832 = sbr.rel (%p1063_p1) target bundleno = 1554 (0x612), region = 64 }
 0x4cb   : > { %v821_v52 = vpop.f32.mrb[8].mxu1 }
 0x4cc   : > { %v827_v53 = vadd.f32 %v821_v52, %v778_v51  ;;  %v1128_v54 = vpop.f32.mrb[9].mxu1 }
 0x4cd   : > { %v824_v55 = vpop.f32.mrb[10].mxu1 }
 0x4ce   : > { %828 = vst.msk [vmem:[#allocation2] sm:$0xff] %vm509_vm2, %v827_v53  ;;  %v1129_v56 = vpop.f32.mrb[11].mxu1 }
 0x4d5   : > { %v833_v57 = vld [vmem:[#allocation2] sm:$0xff] }
 0x4d6   : > { %v835_v59 = vadd.f32 %v834_v58, %v833_v57 }
 0x4d8   : > { %v836_v60 = vsel %vm509_vm2, %v835_v59, 0.0 }
 0x4d9   : > { %837 = vadd.xlane.f32.xlu0 %v836_v60 }
 0x566   : > { %v838_v61 = vpop.xlane.xlu0 %837 }
 0x567   : > { %v840_v62 = vmul.f32 0.03125, %v838_v61 }
 0x569   : > { %v841_v63 = vsub.f32 %v835_v59, %v840_v62 }
 0x56b   : > { %v842_v0 = vmul.f32 %v841_v63, %v841_v63 }
 0x56d   : > { %v843_v1 = vsel %vm509_vm2, %v842_v0, 0.0 }
 0x56e   : > { %844 = vadd.xlane.f32.xlu0 %v843_v1 }
 0x5fb   : > { %v845_v2 = vpop.xlane.xlu0 %844 }
 0x5fc   : > { %v846_v3 = vmul.f32 0.03125, %v845_v2 }
 0x5fe   : > { %v847_v4 = vadd.f32 1e-05, %v846_v3 }
 0x600   : > { %1214 = vrsqrt.f32 %v847_v4 }
 0x60a   : > { %v1215_v5 = vpop.eup %1214 }
 0x60b   : > { %v849_v7 = vmul.f32 %v1215_v5, %v841_v63 }
 0x60d   : > { %v857_v9 = vmul.f32 %v1064_v6, %v849_v7 }
 0x60f   : > { %v865_v10 = vadd.f32 %v1065_v8, %v857_v9 }
 0x611   : > { %866 = vst.msk [vmem:[%s444_s26] sm:$0xff] %vm509_vm2, %v865_v10 }
 0x612 PF: > { %s1067_s29 = sshll.u32 %s1298_s13, 7  ;;  %s1611_s28 = sld [smem:[#allocation17_spill]] }
 0x613   : > { %s882_s23 = sshll.u32 %s444_s26, 4  ;;  %s1612_s19 = sand.u32 1, %s1286_s10   ;;  %s883_s23 = int_to_ptr.vmem [resolvable:$true] %s882_s23 }
 0x614   : > { %s868_s20 = scalar_lea.sflag [#allocation4], %s1612_s19  ;;  %s1216_s14 = scalar_lea.vmem %s883_s23, 128 }
 0x615   : > { %p1217_p2 = scmp.ne.s32.totalorder %s883_s23, %s1216_s14  ;;  %s1315_s1 = smov [#allocation3]  }
 0x616   : > { %s1220_s9 = sshll.u32 %s1315_s1, 4  ;;  %s1221_s9 = int_to_ptr.vmem [resolvable:$false] %s1220_s9 }
 0x617   : > { %p1218_p4 = pnand %p1217_p2, %p1415_p3  ;;  %s1222_s30 = scalar_lea.vmem %s1221_s9, 256 }
 0x618   : > { %s1521_s18 = scalar_lea.hbm %s1611_s28, %s1067_s29  ;;  %p1223_p6 = scmp.lt.s32.totalorder %s883_s23, %s1221_s9 }
 0x619   : > { %p1219_p5 = pneg %p1218_p4  ;;  %p1224_p7 = scmp.lt.s32.totalorder %s1222_s30, %s1216_s14 }
 0x61b   : > { %p1225_p8 = por %p1224_p7, %p1223_p6 }
 0x61d   : > { %p1226_p10 = pnand %p1225_p8, %p1219_p5 }
 0x61f   : > { %1229 = shalt.err (!%p1226_p10)
}
 0x620   : > { %s1230_s13 = scalar_lea.hbm %s1521_s18, 128  ;;  %s1234_s11 = scalar_lea.hbm %s1611_s28, 256 }
 0x621   : > { %p1231_p11 = scmp.ne.s32.totalorder %s1521_s18, %s1230_s13  ;;  %p1235_p0 = scmp.lt.u32.totalorder %s1521_s18, %s1611_s28 }
 0x622   : > { %p1236_p1 = scmp.lt.u32.totalorder %s1234_s11, %s1230_s13  ;;  %p1238_p4 = scmp.lt.u32.totalorder %s1230_s13, %s1521_s18 }
 0x623   : > { %p1232_p12 = pnand %p1231_p11, %p1415_p3 }
 0x624   : > { %p1237_p2 = por %p1236_p1, %p1235_p0 }
 0x625   : > { %p1233_p13 = pneg %p1232_p12 }
 0x626   : > { %p1239_p5 = por %p1238_p4, %p1237_p2 }
 0x628   : > { %p1240_p6 = pnand %p1239_p5, %p1233_p13 }
 0x62a   : > { %1243 = shalt.err (!%p1240_p6)
}
 0x62b   : > { %1130 = dma.vmem_to_hbm [thread:$0]  (%p1415_p3), %s883_s23, 128, %s1521_s18, %s868_s20  }
 0x62c PF: > { %s1613_s16 = sld [smem:[#allocation10_spill]]  ;;  %s1614_s21 = sld [smem:[#allocation6_spill]] }
 0x632   : > { %p1136_p7 = scmp.ge.s32.totalorder %s1613_s16, 2  ;;  %s894_s29 = sand.u32 1, %s1614_s21  }
 0x633   : > { %s895_s17 = scalar_lea.sflag [#allocation4], %s894_s29 }
 0x634   : > { %p1133_p8 = pnand %p1136_p7, %p1425_p9 }
 0x636   : > { %1277 = dma.done.wait (!%p1133_p8), %s895_s17, 128  }
 0x637   : > { %1279 = vsyncadd (!%p1133_p8), %s895_s17, 4294967168  ;;  %s22_s16 = sadd.s32 1, %s1613_s16   ;;  %s1616_s24 = sld [smem:[#allocation7_spill]] }
 0x638   : > { %p19_p10 = scmp.ge.s32.totalorder %s22_s16, 10   ;;  %s1617_s11 = sld [smem:[#allocation15_spill]] }
 0x639   : > { %s1618_s12 = sld [smem:[#allocation8_spill]]  ;;  %s1619_s13 = sld [smem:[#allocation9_spill]] }
 0x63a   : > { %s1620_s14 = sld [smem:[#allocation11_spill]]  ;;  %s1621_s15 = sld [smem:[#allocation13_spill]] }
 0x63b   : > { %s1622_s30 = smov %s1286_s10  ;;  %21 = sbr.rel (!%p19_p10) target bundleno = 8 (0x8), region = 117 }
 0x63d   : > { %s1623_s10 = smov %s1616_s24 }
 0x642   :  { %900 = vsyncpa [#allocation4], 1 }
 0x643   :  { %902 = vsyncpa [#allocation4 + $0x1], 1 }

</bundles_post_ra>
